<compile_context>
chip_gen: v5e
topology: v5e:2x2
jax: 0.10.0
libtpu: 0.0.40
codegen_flags: <defaults>
</compile_context>

<pallas_src>
import functools

import jax
import jax.numpy as jnp
from jax.experimental import pallas as pl
from jax.experimental.pallas import tpu as pltpu

_LANES = 128
_SUBLANES = 8


def _pretrain_loss_kernel(n_qq, n_qs, n_ss, xy_ref, out_ref):
    # xy_ref: (2, rows, 128) f32 slab; [0] = logits, [1] = targets.
    # out_ref: (1,) f32 in SMEM.
    x = xy_ref[0]
    y = xy_ref[1]

    # probs = sigmoid(logits); BCEWithLogits(probs, labels) with probs > 0:
    #   per_elem = p*(1 - y) + log1p(exp(-p))
    # (exact sigmoid kept; approx reciprocal would perturb results beyond the
    #  1e-5 reference tolerance and EUP is nowhere near the bottleneck here)
    p = jax.nn.sigmoid(x)
    per_elem = p * (1.0 - y) + jnp.log1p(jnp.exp(-p))

    # Rebuild the per-element weight (per-pair 1/n mean, 0 on padding) from
    # the flat element index.  n_qq/n_qs/n_ss are Python ints closed over at
    # trace time, so every constant below is static.
    rows, lanes = per_elem.shape
    flat = (jax.lax.broadcasted_iota(jnp.int32, (rows, lanes), 0) * lanes
            + jax.lax.broadcasted_iota(jnp.int32, (rows, lanes), 1))
    b0 = n_qq
    b1 = n_qq + n_qs
    b2 = n_qq + n_qs + n_ss
    w = jnp.where(
        flat < b0, jnp.float32(1.0 / n_qq),
        jnp.where(
            flat < b1, jnp.float32(1.0 / n_qs),
            jnp.where(flat < b2, jnp.float32(1.0 / n_ss), jnp.float32(0.0))))

    # Single weighted XLU reduce replaces three per-pair means + scalar adds.
    out_ref[0] = jnp.sum(w * per_elem)


def pretrain_loss(qq_logits, qq_target, qs_logits, qs_target,
                  ss_logits, ss_target):
    """Returns a scalar float32, identical to PretrainLoss.forward."""
    pairs = [(qq_logits, qq_target),
             (qs_logits, qs_target),
             (ss_logits, ss_target)]
    sizes = [int(lg.size) for lg, _ in pairs]
    total = sum(sizes)

    # --- layout plumbing: pack both operands into ONE lane-dense slab -------
    tile = _SUBLANES * _LANES
    padded = max(tile, ((total + tile - 1) // tile) * tile)
    pad = padded - total
    rows = padded // _LANES

    x = jnp.concatenate([jnp.ravel(lg).astype(jnp.float32) for lg, _ in pairs])
    y = jnp.concatenate([jnp.ravel(tg).astype(jnp.float32) for _, tg in pairs])
    if pad:
        x = jnp.pad(x, (0, pad))     # padding gets weight 0 in-kernel
        y = jnp.pad(y, (0, pad))
    xy = jnp.stack([x, y]).reshape(2, rows, _LANES)

    kernel = functools.partial(_pretrain_loss_kernel, *sizes)

    elems = padded
    cost = pl.CostEstimate(
        flops=8 * elems,                    # mul/add/where/iota per element
        transcendentals=3 * elems,          # sigmoid, exp, log1p
        bytes_accessed=2 * elems * 4 + 4)   # one f32 slab in, one scalar out

    out = pl.pallas_call(
        kernel,
        out_shape=jax.ShapeDtypeStruct((1,), jnp.float32),
        in_specs=[pl.BlockSpec((2, rows, _LANES), lambda: (0, 0, 0))],
        out_specs=pl.BlockSpec(memory_space=pltpu.SMEM),
        cost_estimate=cost,
    )(xy)
    return out[0]


def _reference(qq_l, qq_t, qs_l, qs_t, ss_l, ss_t):
    def one(x, y):
        p = jax.nn.sigmoid(x.astype(jnp.float32))
        y = y.astype(jnp.float32)
        return jnp.mean(p - p * y + jnp.log1p(jnp.exp(-p)))
    return one(qq_l, qq_t) + one(qs_l, qs_t) + one(ss_l, ss_t)


if __name__ == "__main__":
    key = jax.random.PRNGKey(0)
    k = jax.random.split(key, 6)

    # Small shapes consistent with pairwise (question/skill) relation logits.
    qq_logits = jax.random.normal(k[0], (16, 16), dtype=jnp.float32)
    qq_target = (jax.random.uniform(k[1], (16, 16)) > 0.5).astype(jnp.float32)
    qs_logits = jax.random.normal(k[2], (16, 8), dtype=jnp.float32)
    qs_target = (jax.random.uniform(k[3], (16, 8)) > 0.5).astype(jnp.float32)
    ss_logits = jax.random.normal(k[4], (8, 8), dtype=jnp.float32)
    ss_target = (jax.random.uniform(k[5], (8, 8)) > 0.5).astype(jnp.float32)

    loss = pretrain_loss(qq_logits, qq_target, qs_logits, qs_target,
                         ss_logits, ss_target)
    loss = jax.block_until_ready(loss)

    ref = _reference(qq_logits, qq_target, qs_logits, qs_target,
                     ss_logits, ss_target)
    assert jnp.allclose(loss, ref, atol=1e-5, rtol=1e-5), (loss, ref)

    print("KERNEL_OK")
</pallas_src>

<mosaic_0001>
module attributes {stable_mosaic.version = 11 : i64} {
  func.func @_pretrain_loss_kernel(%arg0: memref<2x8x128xf32, #tpu.memory_space<vmem>>, %arg1: memref<1xf32, #tpu.memory_space<smem>>) attributes {dimension_semantics = [], scalar_prefetch = 0 : i64, scratch_operands = 0 : i64, tpu.core_type = #tpu.core_type<tc>} {
    %c0 = arith.constant 0 : index
    %c0_0 = arith.constant 0 : index
    %c0_1 = arith.constant 0 : index
    %0 = vector.load %arg0[%c0, %c0_0, %c0_1] : memref<2x8x128xf32, #tpu.memory_space<vmem>>, vector<1x8x128xf32>
    %1 = vector.shape_cast %0 : vector<1x8x128xf32> to vector<8x128xf32>
    %c1 = arith.constant 1 : index
    %c0_2 = arith.constant 0 : index
    %c0_3 = arith.constant 0 : index
    %2 = vector.load %arg0[%c1, %c0_2, %c0_3] : memref<2x8x128xf32, #tpu.memory_space<vmem>>, vector<1x8x128xf32>
    %3 = vector.shape_cast %2 : vector<1x8x128xf32> to vector<8x128xf32>
    %4 = arith.negf %1 : vector<8x128xf32>
    %5 = math.exp %4 : vector<8x128xf32>
    %cst = arith.constant 1.000000e+00 : f32
    %6 = vector.broadcast %cst : f32 to vector<8x128xf32>
    %7 = arith.addf %6, %5 : vector<8x128xf32>
    %8 = arith.divf %6, %7 : vector<8x128xf32>
    %cst_4 = arith.constant 1.000000e+00 : f32
    %9 = vector.broadcast %cst_4 : f32 to vector<8x128xf32>
    %10 = arith.subf %9, %3 : vector<8x128xf32>
    %11 = arith.mulf %8, %10 : vector<8x128xf32>
    %cst_5 = arith.constant 0.000000e+00 : f32
    %12 = vector.broadcast %cst_5 : f32 to vector<8x128xf32>
    %13 = arith.subf %12, %8 : vector<8x128xf32>
    %14 = math.exp %13 : vector<8x128xf32>
    %15 = math.log1p %14 : vector<8x128xf32>
    %16 = arith.addf %11, %15 : vector<8x128xf32>
    %17 = tpu.iota {dimensions = array<i32: 0>} : vector<8x128xi32>
    %c128_i32 = arith.constant 128 : i32
    %18 = vector.broadcast %c128_i32 : i32 to vector<8x128xi32>
    %19 = arith.muli %17, %18 : vector<8x128xi32>
    %20 = tpu.iota {dimensions = array<i32: 1>} : vector<8x128xi32>
    %21 = arith.addi %19, %20 : vector<8x128xi32>
    %c256_i32 = arith.constant 256 : i32
    %22 = vector.broadcast %c256_i32 : i32 to vector<8x128xi32>
    %23 = arith.cmpi slt, %21, %22 : vector<8x128xi32>
    %c384_i32 = arith.constant 384 : i32
    %24 = vector.broadcast %c384_i32 : i32 to vector<8x128xi32>
    %25 = arith.cmpi slt, %21, %24 : vector<8x128xi32>
    %c448_i32 = arith.constant 448 : i32
    %26 = vector.broadcast %c448_i32 : i32 to vector<8x128xi32>
    %27 = arith.cmpi slt, %21, %26 : vector<8x128xi32>
    %cst_6 = arith.constant 1.562500e-02 : f32
    %cst_7 = arith.constant 0.000000e+00 : f32
    %28 = vector.broadcast %cst_6 : f32 to vector<8x128xf32>
    %29 = vector.broadcast %cst_7 : f32 to vector<8x128xf32>
    %30 = arith.select %27, %28, %29 : vector<8x128xi1>, vector<8x128xf32>
    %cst_8 = arith.constant 7.812500e-03 : f32
    %31 = vector.broadcast %cst_8 : f32 to vector<8x128xf32>
    %32 = arith.select %25, %31, %30 : vector<8x128xi1>, vector<8x128xf32>
    %cst_9 = arith.constant 3.906250e-03 : f32
    %33 = vector.broadcast %cst_9 : f32 to vector<8x128xf32>
    %34 = arith.select %23, %33, %32 : vector<8x128xi1>, vector<8x128xf32>
    %35 = arith.mulf %34, %16 : vector<8x128xf32>
    %36 = vector.shape_cast %35 : vector<8x128xf32> to vector<1x8x128xf32>
    %cst_10 = arith.constant dense<0.000000e+00> : vector<1xf32>
    %37 = vector.multi_reduction <add>, %36, %cst_10 [1, 2] : vector<1x8x128xf32> to vector<1xf32>
    %38 = vector.shape_cast %37 : vector<1xf32> to vector<1x1x1xf32>
    %39 = vector.extract %38[0, 0, 0] : f32 from vector<1x1x1xf32>
    %c0_11 = arith.constant 0 : index
    %40 = memref.load %arg1[%c0_11] : memref<1xf32, #tpu.memory_space<smem>>
    memref.store %39, %arg1[%c0_11] : memref<1xf32, #tpu.memory_space<smem>>
    return
  }
}

</mosaic_0001>

<bundles_post_ra>
// kernel: tpu_custom_call.1
= control target key start
LH: loop header
LB: loop body
LE: loop exit
PB: predicated region body
PF: predicated region fallthrough
CT: control target
= control target key end

     0   :  { %6 = vsyncpa [#allocation3], 0  ;;  %s179_s0 = inlined_call_operand.hbm [shape: f32[2,8,128], index: 0, kind: input, shape index: {}]   ;;  %s180_s1 = inlined_call_operand.hbm [shape: f32[1], index: 1, kind: output, shape index: {}]  }
   0x1   :  { %7 = vsyncpa [#allocation4], 0  ;;  %s12_s8 = sshll.u32 %s179_s0, 4  ;;  %s158_s9 = smov [#allocation2]   ;;  %s13_s8 = int_to_ptr.hbm [resolvable:$true] %s12_s8 }
   0x2   :  { %s14_s10 = sshll.u32 %s158_s9, 4  ;;  %s159_s11 = smov 128   ;;  %s15_s10 = int_to_ptr.vmem [resolvable:$true] %s14_s10 }
   0x3   :  { %s160_s12 = smov 8  }
   0x4   :  { %20 = dma.hbm_to_vmem [thread:$0]  %s13_s8, 256, %s15_s10, [#allocation3], %s159_s11, %s159_s11, %s160_s12  }
   0x5   :  { %154 = dma.done.wait [#allocation3], 256  }
   0x6   :  { %155 = vsyncadd [#allocation3], 4294967040  ;;  %v25_v0 = vld [vmem:[#allocation2] sm:$0xff]  ;;  %v62_v12 = vlaneseq  ;;  %v27_v24 = vld [vmem:[#allocation2 + $0x8] sm:$0xff]  ;;  %v161_v28 = vmov 0.0   ;;  %s91_s14 = sshll.u32 %s180_s1, 4  ;;  %s92_s14 = int_to_ptr.hbm [resolvable:$true] %s91_s14 }
   0x7   :  { %v102_v1 = vmul.f32 -1.442695, %v25_v0  ;;  %v47_v26 = vsub.f32 1.0, %v27_v24  ;;  %s162_s16 = smov [#allocation5]  }
   0x8   :  { %v63_v16 = vshrl.u32 %v62_v12, 7  ;;  %v66_v19 = vand.u32 127, %v62_v12 }
   0x9   :  { %110 = vpow2.f32 %v102_v1 }
   0xa   :  { %v64_v18 = vmul.u32 128, %v63_v16 }
   0xc   :  { %v67_v20 = vadd.s32 %v66_v19, %v64_v18 }
   0xe   :  { %vm70_vm4 = vcmp.lt.s32.totalorder %v67_v20, 448  ;;  %vm69_vm5 = vcmp.lt.s32.totalorder %v67_v20, 384  ;;  %vm68_vm7 = vcmp.lt.s32.totalorder %v67_v20, 256 }
   0xf   :  { %v111_v2 = vpop.eup %110  ;;  %v71_v29 = vsel %vm70_vm4, 0.015625, %v161_v28 }
  0x10   :  { %v31_v3 = vadd.f32 1.0, %v111_v2  ;;  %v72_v33 = vsel %vm69_vm5, 0.0078125, %v71_v29 }
  0x11   :  { %v73_v36 = vsel %vm68_vm7, 0.00390625, %v72_v33 }
  0x12   :  { %112 = vrcp.f32 %v31_v3  ;;  %v43_v6 = vand.u32 2147483648, %v31_v3  ;;  %vm37_vm0 = vweird.f32 %v31_v3  ;;  %v41_v8 = vand.u32 2147483647, %v31_v3 }
  0x14   :  { %v44_v10 = vor.u32 1.1754944e-38, %v43_v6  ;;  %vm42_vm3 = vcmp.eq.f32.partialorder %v41_v8, 8.507059e+37 }
  0x18   :  { %v113_v4 = vpop.eup %112 }
  0x19   :  { %v33_v5 = vmul.f32 %v113_v4, %v31_v3  ;;  %vm38_vm1 = vweird.f32 %v113_v4 }
  0x1a   :  { %vm39_vm2 = vmor %vm37_vm0, %vm38_vm1 }
  0x1b   :  { %v34_v7 = vsub.f32 1.0, %v33_v5 }
  0x1d   :  { %v35_v9 = vmul.f32 %v113_v4, %v34_v7 }
  0x1f   :  { %v36_v11 = vadd.f32 %v113_v4, %v35_v9 }
  0x21   :  { %v40_v13 = vsel %vm39_vm2, %v113_v4, %v36_v11 }
  0x22   :  { %v45_v14 = vsel %vm42_vm3, %v44_v10, %v40_v13 }
  0x23   :  { %v49_v15 = vsub.f32 0.0, %v45_v14  ;;  %v48_v32 = vmul.f32 %v47_v26, %v45_v14 }
  0x25   :  { %v50_v17 = vmul.f32 1.442695, %v49_v15 }
  0x27   :  { %114 = vpow2.f32 %v50_v17 }
  0x2d   :  { %v115_v21 = vpop.eup %114 }
  0x2e   :  { %v52_v22 = vadd.f32 1.0, %v115_v21  ;;  %v55_v23 = vmul.f32 -0.5, %v115_v21  ;;  %v58_v27 = vand.u32 2147483647, %v115_v21 }
  0x30   :  { %116 = vlog2.f32 %v52_v22  ;;  %v56_v25 = vadd.f32 1.0, %v55_v23  ;;  %vm59_vm6 = vcmp.lt.f32.partialorder %v58_v27, 0.0004427343 }
  0x32   :  { %v57_v30 = vmul.f32 %v115_v21, %v56_v25 }
  0x36   :  { %v117_v31 = vpop.eup %116 }
  0x37   :  { %v54_v34 = vmul.f32 0.6931472, %v117_v31 }
  0x39   :  { %v60_v35 = vsel %vm59_vm6, %v57_v30, %v54_v34 }
  0x3a   :  { %v61_v37 = vadd.f32 %v60_v35, %v48_v32 }
  0x3c   :  { %v74_v38 = vmul.f32 %v73_v36, %v61_v37 }
  0x3e   :  { %75 = vadd.xlane.f32.xlu0 %v74_v38 }
  0xb1   :  { %v76_v39 = vpop.xlane.xlu0 %75 }
  0xb2   :  { %v77_v40 = vrot.slane %v76_v39, 4 }
  0xb4   :  { %v78_v41 = vadd.f32 %v77_v40, %v76_v39 }
  0xb6   :  { %v79_v42 = vrot.slane %v78_v41, 2 }
  0xb8   :  { %v80_v43 = vadd.f32 %v79_v42, %v78_v41 }
  0xba   :  { %v81_v44 = vrot.slane %v80_v43, 1 }
  0xbc   :  { %v82_v45 = vadd.f32 %v81_v44, %v80_v43 }
  0xbe   :  { %103 = vpush %v82_v45 }
  0xef   :  { %s104_s15 = spop %103 }
  0xf0   :  { %85 = sst [smem:[#allocation5]] %s104_s15 }
  0xf1   :  { %94 = dma.smem_to_hbm %s162_s16, 16, %s92_s14, [#allocation4]  }
  0xf2   :  { %156 = dma.done.wait [#allocation4], 16  }
  0xf3   :  { %157 = vsyncadd [#allocation4], 4294967280 }
  0xf4   :  { %99 = sfence }
  0xf5   :  { %100 = vsyncpa [#allocation3], 1 }
  0xf6   :  { %101 = vsyncpa [#allocation4], 1 }

</bundles_post_ra>
